<compile_context>
chip_gen: v5e
topology: v5e:2x2
jax: 0.10.0
libtpu: 0.0.40
codegen_flags: <defaults>
</compile_context>

<pallas_src>
import functools
import numpy as np
import jax
import jax.numpy as jnp
from jax.experimental import pallas as pl
from jax.experimental.pallas import tpu as pltpu

NEG_LARGE = -1e30          # finite "minus infinity" for masked (padded) class columns
C_PAD = 128                # class dim padded to one full 128-lane vreg
TM_MAX = 1024              # row-tile cap (safe on v5e/v6e/v7x VMEM budgets)
SLAB_ROWS = 8              # per-block partial-sum slab = one (8,128) f32 tile

_COMPILER_PARAMS = pltpu.CompilerParams(
    dimension_semantics=("parallel",),          # row tiles are fully independent
    vmem_limit_bytes=32 * 1024 * 1024,          # explicit: fits v7x's 64 MiB physical VMEM
)


# ----------------------------- small helpers --------------------------------

def _round_up(n, m):
    return (n + m - 1) // m * m


def _choose_tile(n, tmax=TM_MAX):
    # multiple of 16 so bf16 (16,128) sublane packing is always clean
    return min(tmax, _round_up(max(n, 1), 16))


def _pad_rows(x, n_pad, value=0):
    n = x.shape[0]
    if n == n_pad:
        return x
    widths = [(0, n_pad - n)] + [(0, 0)] * (x.ndim - 1)
    return jnp.pad(x, widths, constant_values=value)


def _pad_cols(w, to):
    if w.shape[1] >= to:
        return w
    return jnp.pad(w, ((0, 0), (0, to - w.shape[1])))


def _full_spec(arr):
    nd = arr.ndim
    return pl.BlockSpec(tuple(arr.shape), lambda i, _nd=nd: (0,) * _nd)


def _nbytes(*arrays):
    return int(sum(int(np.prod(a.shape)) * np.dtype(a.dtype).itemsize for a in arrays))


def _cost(flops, transcendentals, bytes_accessed):
    return pl.CostEstimate(flops=int(flops), transcendentals=int(transcendentals),
                           bytes_accessed=int(bytes_accessed))


# ------------------------- in-kernel shared pieces ---------------------------

def _masked_logits(logits, num_classes):
    col = jax.lax.broadcasted_iota(jnp.int32, logits.shape, 1)
    return jnp.where(col < num_classes, logits, NEG_LARGE), col


def _ce_partials(logits, labels, num_classes, ignore):
    """Block-local sum of masked -log_softmax[target] and valid-row count."""
    lg, col = _masked_logits(logits, num_classes)
    m = jnp.max(lg, axis=-1, keepdims=True)
    s = jnp.sum(jnp.exp(lg - m), axis=-1, keepdims=True)
    lse = m + jnp.log(s)
    picked = jnp.sum(jnp.where(col == labels, lg, 0.0), axis=-1, keepdims=True)
    valid = (labels != ignore).astype(jnp.float32)
    return jnp.sum(valid * (lse - picked)), jnp.sum(valid)


def _write_partials(out_ref, values):
    """Lane-dense (8,128) partial-sum tile: values land at flat indices 0,1,2,..."""
    r = jax.lax.broadcasted_iota(jnp.int32, out_ref.shape, 0)
    c = jax.lax.broadcasted_iota(jnp.int32, out_ref.shape, 1)
    flat = r * out_ref.shape[1] + c
    acc = jnp.zeros(out_ref.shape, jnp.float32)
    for k, v in enumerate(values):
        acc = acc + jnp.where(flat == k, v, 0.0)
    out_ref[...] = acc


# ----------------------------- Pallas kernels --------------------------------

def _mlp3d_ce_kernel(num_classes, ignore, x_ref, lab_ref, w1_ref, b1_ref,
                     w2_ref, b2_ref, slab_ref):
    # multihead_3d_classifier: Linear(H,128) -> ReLU -> Linear(128, C) fused with CE.
    h = jnp.dot(x_ref[...], w1_ref[...], preferred_element_type=jnp.float32) + b1_ref[...]
    h = jnp.maximum(h, 0.0)
    logits = jnp.dot(h.astype(jnp.bfloat16), w2_ref[...],
                     preferred_element_type=jnp.float32) + b2_ref[...]
    loss_sum, valid_sum = _ce_partials(logits, lab_ref[...], num_classes, ignore)
    _write_partials(slab_ref, (loss_sum, valid_sum))


def _fuse_loss_kernel(num_classes, ignore, n_valid,
                      img_ref, pts_ref, lab_ref,
                      wl_ref, bl_ref, wf1_ref, bf1_ref, wf2_ref, bf2_ref,
                      wc1_ref, bc1_ref, wc2_ref, bc2_ref,
                      w3d1_ref, b3d1_ref, w3d2_ref, b3d2_ref,
                      fuse_feat_ref, slab_ref):
    img = img_ref[...]                       # (TM, H) bf16
    pts = pts_ref[...]                       # (TM, H) bf16
    H = pts.shape[1]
    tm = pts.shape[0]

    # 3D head on the gathered rows (gather commutes with row-wise MLP, so this
    # equals p2img_mapping(pts_pred_full[coors_inv])) — no logits HBM round trip.
    h3 = jnp.maximum(jnp.dot(pts, w3d1_ref[...], preferred_element_type=jnp.float32)
                     + b3d1_ref[...], 0.0)
    pts_logits = jnp.dot(h3.astype(jnp.bfloat16), w3d2_ref[...],
                         preferred_element_type=jnp.float32) + b3d2_ref[...]

    # fusion + gating
    fl = jnp.maximum(jnp.dot(pts, wl_ref[...], preferred_element_type=jnp.float32)
                     + bl_ref[...], 0.0)
    feat_cat = (jnp.dot(img, wf1_ref[:H, :], preferred_element_type=jnp.float32)
                + jnp.dot(fl.astype(jnp.bfloat16), wf1_ref[H:, :],
                          preferred_element_type=jnp.float32)
                + bf1_ref[...])
    z = jnp.dot(feat_cat.astype(jnp.bfloat16), wf2_ref[...],
                preferred_element_type=jnp.float32) + bf2_ref[...]
    gate = pl.reciprocal(1.0 + jnp.exp(-z), approx=True)      # sigmoid via EUP vrcp
    fuse_feat = jnp.maximum(feat_cat * gate, 0.0)
    fuse_feat_ref[...] = fuse_feat.astype(jnp.bfloat16)

    # fuse classifier
    hf = jnp.maximum(jnp.dot(fuse_feat.astype(jnp.bfloat16), wc1_ref[...],
                             preferred_element_type=jnp.float32) + bc1_ref[...], 0.0)
    fuse_logits = jnp.dot(hf.astype(jnp.bfloat16), wc2_ref[...],
                          preferred_element_type=jnp.float32) + bc2_ref[...]

    # CE(fuse_logits, img_label)
    labels = lab_ref[...]
    flg, col = _masked_logits(fuse_logits, num_classes)
    mf = jnp.max(flg, axis=-1, keepdims=True)
    pf = jnp.exp(flg - mf)
    sf = jnp.sum(pf, axis=-1, keepdims=True)
    lse = mf + jnp.log(sf)
    picked = jnp.sum(jnp.where(col == labels, flg, 0.0), axis=-1, keepdims=True)
    valid = (labels != ignore).astype(jnp.float32)
    ce_sum = jnp.sum(valid * (lse - picked))
    ce_cnt = jnp.sum(valid)

    # KL: F.kl_div(log_softmax(pts_logits), softmax(fuse_logits)), sum of elements.
    pt = pf / sf
    log_pt = (flg - mf) - jnp.log(sf)
    qlg, _ = _masked_logits(pts_logits, num_classes)
    mq = jnp.max(qlg, axis=-1, keepdims=True)
    sq = jnp.sum(jnp.exp(qlg - mq), axis=-1, keepdims=True)
    log_q = (qlg - mq) - jnp.log(sq)
    row = jax.lax.broadcasted_iota(jnp.int32, flg.shape, 0) + pl.program_id(0) * tm
    live = (row < n_valid) & (col < num_classes) & (pt > 0.0)   # zero-target terms -> 0
    kl_sum = jnp.sum(jnp.where(live, pt * (log_pt - log_q), 0.0))

    _write_partials(slab_ref, (ce_sum, ce_cnt, kl_sum))


def _final_ce_kernel(num_scales, num_classes, ignore, *refs):
    feats = refs[:num_scales]
    lab_ref = refs[num_scales]
    w1s = refs[num_scales + 1: 2 * num_scales + 1]
    b1_ref, w2_ref, b2_ref, slab_ref = refs[2 * num_scales + 1:]
    tm = feats[0].shape[0]
    acc = jnp.zeros((tm, w1s[0].shape[1]), jnp.float32)
    for s in range(num_scales):       # concat-free: split-weight partial matmuls
        acc = acc + jnp.dot(feats[s][...], w1s[s][...],
                            preferred_element_type=jnp.float32)
    h = jnp.maximum(acc + b1_ref[...], 0.0)
    logits = jnp.dot(h.astype(jnp.bfloat16), w2_ref[...],
                     preferred_element_type=jnp.float32) + b2_ref[...]
    loss_sum, valid_sum = _ce_partials(logits, lab_ref[...], num_classes, ignore)
    _write_partials(slab_ref, (loss_sum, valid_sum))


# ------------------------------ kernel wrappers -------------------------------

def mlp3d_ce_loss(pts_feat, vox_labels, p, num_classes, ignore):
    """CE(multihead_3d_classifier(pts_feat), vox_labels), fused reduction."""
    n, H = pts_feat.shape
    tm = _choose_tile(n)
    n_pad = _round_up(n, tm)
    g = n_pad // tm
    x = _pad_rows(pts_feat.astype(jnp.bfloat16), n_pad)
    lab = _pad_rows(vox_labels.reshape(-1, 1).astype(jnp.int32), n_pad, ignore)
    args = (x, lab, p['w3d1'], p['b3d1'], p['w3d2'], p['b3d2'])
    in_specs = [pl.BlockSpec((tm, H), lambda i: (i, 0)),
                pl.BlockSpec((tm, 1), lambda i: (i, 0))] + \
               [_full_spec(a) for a in args[2:]]
    flops = 2 * n_pad * (H * 128 + 128 * C_PAD)
    cost = _cost(flops, n_pad * C_PAD, _nbytes(*args) + g * SLAB_ROWS * 128 * 4)
    slab = pl.pallas_call(
        functools.partial(_mlp3d_ce_kernel, num_classes, ignore),
        grid=(g,),
        in_specs=in_specs,
        out_specs=pl.BlockSpec((SLAB_ROWS, 128), lambda i: (i, 0)),
        out_shape=jax.ShapeDtypeStruct((g * SLAB_ROWS, 128), jnp.float32),
        compiler_params=_COMPILER_PARAMS,
        cost_estimate=cost,
    )(*args)
    return jnp.sum(slab[:, 0]) / jnp.maximum(jnp.sum(slab[:, 1]), 1.0)


def fuse_scale_loss(img_feat, pts_feat_m, img_label, p, num_classes, ignore):
    """Fusion + gating + fuse classifier + 2D CE + KL, all in one row-tiled kernel."""
    m, H = img_feat.shape
    tm = _choose_tile(m)
    m_pad = _round_up(m, tm)
    g = m_pad // tm
    img = _pad_rows(img_feat.astype(jnp.bfloat16), m_pad)
    pts = _pad_rows(pts_feat_m.astype(jnp.bfloat16), m_pad)
    lab = _pad_rows(img_label.reshape(-1, 1).astype(jnp.int32), m_pad, ignore)
    wkeys = ('wl', 'bl', 'wf1', 'bf1', 'wf2', 'bf2',
             'wc1', 'bc1', 'wc2', 'bc2', 'w3d1', 'b3d1', 'w3d2', 'b3d2')
    weights = [p[k] for k in wkeys]
    args = (img, pts, lab, *weights)
    in_specs = [pl.BlockSpec((tm, H), lambda i: (i, 0)),
                pl.BlockSpec((tm, H), lambda i: (i, 0)),
                pl.BlockSpec((tm, 1), lambda i: (i, 0))] + \
               [_full_spec(w) for w in weights]
    out_shape = (jax.ShapeDtypeStruct((m_pad, H), jnp.bfloat16),
                 jax.ShapeDtypeStruct((g * SLAB_ROWS, 128), jnp.float32))
    out_specs = (pl.BlockSpec((tm, H), lambda i: (i, 0)),
                 pl.BlockSpec((SLAB_ROWS, 128), lambda i: (i, 0)))
    flops = 2 * m_pad * (2 * H * 128 + 2 * 128 * C_PAD + 4 * H * H)
    cost = _cost(flops, m_pad * (3 * C_PAD + H),
                 _nbytes(*args) + m_pad * H * 2 + g * SLAB_ROWS * 128 * 4)
    fuse_feat, slab = pl.pallas_call(
        functools.partial(_fuse_loss_kernel, num_classes, ignore, m),
        grid=(g,),
        in_specs=in_specs,
        out_specs=out_specs,
        out_shape=out_shape,
        compiler_params=_COMPILER_PARAMS,
        cost_estimate=cost,
    )(*args)
    ce2d = jnp.sum(slab[:, 0]) / jnp.maximum(jnp.sum(slab[:, 1]), 1.0)
    xm = jnp.sum(slab[:, 2]) / float(m * num_classes)   # F.kl_div 'mean' over M*C
    return fuse_feat, ce2d, xm


def final_classifier_loss(feat_list, img_label, m, kparams, num_classes, ignore):
    """classifier(cat(feats)) + CE, concat replaced by per-scale partial matmuls."""
    m_pad, H = feat_list[0].shape
    tm = _choose_tile(m)
    g = m_pad // tm
    lab = _pad_rows(img_label.reshape(-1, 1).astype(jnp.int32), m_pad, ignore)
    num_scales = len(feat_list)
    args = (*feat_list, lab, *kparams['wcls1_parts'],
            kparams['bcls1'], kparams['wcls2'], kparams['bcls2'])
    in_specs = [pl.BlockSpec((tm, H), lambda i: (i, 0)) for _ in feat_list] + \
               [pl.BlockSpec((tm, 1), lambda i: (i, 0))] + \
               [_full_spec(a) for a in args[num_scales + 1:]]
    flops = 2 * m_pad * (num_scales * H * 128 + 128 * C_PAD)
    cost = _cost(flops, m_pad * C_PAD, _nbytes(*args) + g * SLAB_ROWS * 128 * 4)
    slab = pl.pallas_call(
        functools.partial(_final_ce_kernel, num_scales, num_classes, ignore),
        grid=(g,),
        in_specs=in_specs,
        out_specs=pl.BlockSpec((SLAB_ROWS, 128), lambda i: (i, 0)),
        out_shape=jax.ShapeDtypeStruct((g * SLAB_ROWS, 128), jnp.float32),
        compiler_params=_COMPILER_PARAMS,
        cost_estimate=cost,
    )(*args)
    return jnp.sum(slab[:, 0]) / jnp.maximum(jnp.sum(slab[:, 1]), 1.0)


# ------------------------------- host-side glue -------------------------------

def voxelize_labels_np(labels, full_coors):
    # host-side numpy replica of torch.unique + torch_scatter.scatter_max voting
    lbxyz = np.concatenate([labels.reshape(-1, 1), full_coors], axis=-1)
    unq, count = np.unique(lbxyz, return_counts=True, axis=0)
    unq_coors, inv_ind = np.unique(unq[:, 1:], return_inverse=True, axis=0)
    out = np.zeros((unq_coors.shape[0],), dtype=np.int32)
    for v in range(unq_coors.shape[0]):
        rows = np.where(inv_ind == v)[0]
        out[v] = unq[rows[np.argmax(count[rows])], 0]
    return out


def build_p2img_row_indices(batch_idx, point2img_index, coors_inv):
    """Compose (batch mask -> p2img gather -> coors_inv gather) into one index array."""
    rows = []
    for b in range(int(batch_idx.max()) + 1):
        batch_rows = np.nonzero(batch_idx == b)[0]
        rows.append(batch_rows[point2img_index[b]])
    rows = np.concatenate(rows, 0)
    return coors_inv[rows]            # (M,) voxel-row indices into pts_feat


# --------------------------------- forward ------------------------------------

def xmodal_kd_forward(data_dict, kparams, cfg):
    scale_list = cfg['scale_list']
    num_scales = len(scale_list)
    lambda_xm = cfg['lambda_xm']
    lambda_seg2d = cfg['lambda_seg2d']
    ignore = cfg['ignore_label']
    C = cfg['num_classes']

    batch_idx = np.asarray(data_dict['batch_idx'])
    point2img_index = [np.asarray(x) for x in data_dict['point2img_index']]
    img_label = data_dict['img_label']
    m = int(img_label.shape[0])

    loss = jnp.float32(0.0)
    img_seg_feat = []
    for idx in range(num_scales):
        last_scale = scale_list[idx - 1] if idx > 0 else 1
        img_feat = data_dict['img_scale{}'.format(scale_list[idx])]
        pts_feat = data_dict['layer_{}'.format(idx)]['pts_feat']
        coors_inv = np.asarray(data_dict['scale_{}'.format(last_scale)]['coors_inv'])
        p = kparams['scales'][idx]

        # voxel-label voting: host numpy glue (data-dependent unique / scatter_max)
        vox_labels = jnp.asarray(voxelize_labels_np(
            np.asarray(data_dict['labels']),
            np.asarray(data_dict['layer_{}'.format(idx)]['full_coors'])))

        # seg_loss_3d: multihead_3d_classifier + CE fused in one Pallas kernel
        # TODO(synk): Lovasz_loss term of seg_loss omitted (per-class sorted-IoU surrogate).
        seg_loss_3d = mlp3d_ce_loss(pts_feat, vox_labels, p, C, ignore)

        # point -> image mapping: single composed fixed-size row gather
        row_idx = jnp.asarray(build_p2img_row_indices(batch_idx, point2img_index, coors_inv))
        pts_feat_m = jnp.take(pts_feat, row_idx, axis=0)

        # fusion + gating + fuse classifier + CE(2D) + KL fused; fuse_pred never hits HBM
        fuse_feat, seg_loss_2d, xm_loss = fuse_scale_loss(
            img_feat, pts_feat_m, img_label, p, C, ignore)

        loss = (loss + seg_loss_3d
                + seg_loss_2d * lambda_seg2d / num_scales
                + xm_loss * lambda_xm / num_scales)
        img_seg_feat.append(fuse_feat)

    loss = loss + final_classifier_loss(img_seg_feat, img_label, m, kparams, C, ignore)
    data_dict['loss'] = data_dict['loss'] + loss
    return data_dict


# -------------------------------- parameters -----------------------------------

def init_params(key, H, C, num_scales):
    """Reference-layout f32 parameters (weights stored as (in, out))."""
    params = {'scales': []}
    state = [key]

    def next_key():
        state[0], sub = jax.random.split(state[0])
        return sub

    def linear(fin, fout):
        w = jax.random.normal(next_key(), (fin, fout), jnp.float32) * 0.1
        b = jax.random.normal(next_key(), (1, fout), jnp.float32) * 0.1
        return w, b

    for _ in range(num_scales):
        w3d1, b3d1 = linear(H, 128)       # multihead_3d_classifier[i][0]
        w3d2, b3d2 = linear(128, C)       # multihead_3d_classifier[i][2]
        wc1, bc1 = linear(H, 128)         # multihead_fuse_classifier[i][0]
        wc2, bc2 = linear(128, C)         # multihead_fuse_classifier[i][2]
        wl, bl = linear(H, H)             # leaners[i]
        wf1, bf1 = linear(2 * H, H)       # fcs1[i]
        wf2, bf2 = linear(H, H)           # fcs2[i]
        params['scales'].append(dict(
            w3d1=w3d1, b3d1=b3d1, w3d2=w3d2, b3d2=b3d2,
            wc1=wc1, bc1=bc1, wc2=wc2, bc2=bc2,
            wl=wl, bl=bl, wf1=wf1, bf1=bf1, wf2=wf2, bf2=bf2))
    wcls1, bcls1 = linear(H * num_scales, 128)   # classifier[0]
    wcls2, bcls2 = linear(128, C)                # classifier[2]
    params.update(wcls1=wcls1, bcls1=bcls1, wcls2=wcls2, bcls2=bcls2)
    return params


def prepare_params(params, num_scales, cpad=C_PAD):
    """bf16 weights, f32 biases, class dim zero-padded to 128 lanes, wcls1 split."""
    out = {'scales': []}
    for p in params['scales']:
        out['scales'].append(dict(
            w3d1=p['w3d1'].astype(jnp.bfloat16), b3d1=p['b3d1'].astype(jnp.float32),
            w3d2=_pad_cols(p['w3d2'], cpad).astype(jnp.bfloat16),
            b3d2=_pad_cols(p['b3d2'], cpad).astype(jnp.float32),
            wc1=p['wc1'].astype(jnp.bfloat16), bc1=p['bc1'].astype(jnp.float32),
            wc2=_pad_cols(p['wc2'], cpad).astype(jnp.bfloat16),
            bc2=_pad_cols(p['bc2'], cpad).astype(jnp.float32),
            wl=p['wl'].astype(jnp.bfloat16), bl=p['bl'].astype(jnp.float32),
            wf1=p['wf1'].astype(jnp.bfloat16), bf1=p['bf1'].astype(jnp.float32),
            wf2=p['wf2'].astype(jnp.bfloat16), bf2=p['bf2'].astype(jnp.float32)))
    H = params['scales'][0]['wl'].shape[0]
    out['wcls1_parts'] = [params['wcls1'][s * H:(s + 1) * H].astype(jnp.bfloat16)
                          for s in range(num_scales)]
    out['bcls1'] = params['bcls1'].astype(jnp.float32)
    out['wcls2'] = _pad_cols(params['wcls2'], cpad).astype(jnp.bfloat16)
    out['bcls2'] = _pad_cols(params['bcls2'], cpad).astype(jnp.float32)
    return out


# ----------------------------------- main ---------------------------------------

if __name__ == "__main__":
    H, C = 32, 8
    scale_list = [2, 4]
    num_scales = len(scale_list)
    cfg = dict(hiden_size=H, num_classes=C, scale_list=scale_list,
               lambda_xm=0.05, lambda_seg2d=1.0, ignore_label=0)

    kparams = prepare_params(init_params(jax.random.PRNGKey(0), H, C, num_scales),
                             num_scales)

    B = 2
    pts_per_batch = 16
    Npts = B * pts_per_batch
    M_b = 8                      # points projecting to image, per batch
    M = B * M_b
    V = [16, 12]                 # voxel counts for layer_0 / layer_1

    keys = jax.random.split(jax.random.PRNGKey(0), 16)

    batch_idx = jnp.repeat(jnp.arange(B, dtype=jnp.int32), pts_per_batch)
    point2img_index = [jax.random.permutation(keys[b], pts_per_batch)[:M_b]
                       for b in range(B)]
    labels = jax.random.randint(keys[2], (Npts,), 0, C, dtype=jnp.int32)
    img_label = jax.random.randint(keys[3], (M,), 0, C, dtype=jnp.int32)

    data = {
        'batch_idx': batch_idx,
        'point2img_index': point2img_index,
        'labels': labels,
        'img_label': img_label,
        'loss': jnp.float32(0.0),
    }

    for idx in range(num_scales):
        ci = jax.random.randint(keys[4 + idx], (Npts,), 0, V[idx], dtype=jnp.int32)
        ci = ci.at[:V[idx]].set(jnp.arange(V[idx], dtype=jnp.int32))  # cover all voxels
        last_scale = scale_list[idx - 1] if idx > 0 else 1
        data['scale_{}'.format(last_scale)] = {'coors_inv': ci}
        ci_np = np.asarray(ci)
        full_coors = np.stack([np.zeros(Npts, np.int32), ci_np,
                               np.zeros(Npts, np.int32), np.zeros(Npts, np.int32)], axis=1)
        pts_feat = jax.random.normal(keys[6 + idx], (V[idx], H), jnp.float32)
        data['layer_{}'.format(idx)] = {'pts_feat': pts_feat, 'full_coors': full_coors}
        data['img_scale{}'.format(scale_list[idx])] = jax.random.normal(
            keys[8 + idx], (M, H), jnp.float32)

    out = xmodal_kd_forward(data, kparams, cfg)
    jax.block_until_ready(out['loss'])
    assert bool(jnp.isfinite(out['loss']))
    print("KERNEL_OK")
</pallas_src>

<mosaic_0001>
module attributes {stable_mosaic.version = 11 : i64} {
  func.func @_mlp3d_ce_kernel(%arg0: i32, %arg1: memref<16x32xbf16, #tpu.memory_space<vmem>>, %arg2: memref<16x1xi32, #tpu.memory_space<vmem>>, %arg3: memref<32x128xbf16, #tpu.memory_space<vmem>>, %arg4: memref<1x128xf32, #tpu.memory_space<vmem>>, %arg5: memref<128x128xbf16, #tpu.memory_space<vmem>>, %arg6: memref<1x128xf32, #tpu.memory_space<vmem>>, %arg7: memref<8x128xf32, #tpu.memory_space<vmem>>) attributes {dimension_semantics = [#tpu.dimension_semantics<parallel>], iteration_bounds = array<i64: 1>, scalar_prefetch = 0 : i64, scratch_operands = 0 : i64, tpu.core_type = #tpu.core_type<tc>, window_params = [{transform_indices = @transform_0, window_bounds = array<i64: 16, 32>}, {transform_indices = @transform_1, window_bounds = array<i64: 16, 1>}, {pipeline_mode = #tpu.pipeline_mode<synchronous>, transform_indices = @transform_2, window_bounds = array<i64: 32, 128>}, {pipeline_mode = #tpu.pipeline_mode<synchronous>, transform_indices = @transform_3, window_bounds = array<i64: 1, 128>}, {pipeline_mode = #tpu.pipeline_mode<synchronous>, transform_indices = @transform_4, window_bounds = array<i64: 128, 128>}, {pipeline_mode = #tpu.pipeline_mode<synchronous>, transform_indices = @transform_5, window_bounds = array<i64: 1, 128>}, {transform_indices = @transform_6, window_bounds = array<i64: 8, 128>}]} {
    %c0 = arith.constant 0 : index
    %c0_0 = arith.constant 0 : index
    %0 = vector.load %arg1[%c0, %c0_0] : memref<16x32xbf16, #tpu.memory_space<vmem>>, vector<16x32xbf16>
    %c0_1 = arith.constant 0 : index
    %c0_2 = arith.constant 0 : index
    %1 = vector.load %arg3[%c0_1, %c0_2] : memref<32x128xbf16, #tpu.memory_space<vmem>>, vector<32x128xbf16>
    %cst = arith.constant dense<0.000000e+00> : vector<16x128xf32>
    %2 = tpu.matmul %0, %1, %cst {dimension_numbers = #tpu.dot_dimension_numbers<[1], [0], [0], [1], [0, 0, 1, 1], [], []>} : vector<16x32xbf16>, vector<32x128xbf16>, vector<16x128xf32> -> vector<16x128xf32>
    %c0_3 = arith.constant 0 : index
    %c0_4 = arith.constant 0 : index
    %3 = vector.load %arg4[%c0_3, %c0_4] : memref<1x128xf32, #tpu.memory_space<vmem>>, vector<1x128xf32>
    %4 = vector.broadcast %3 : vector<1x128xf32> to vector<16x128xf32>
    %5 = arith.addf %2, %4 : vector<16x128xf32>
    %cst_5 = arith.constant 0.000000e+00 : f32
    %6 = vector.broadcast %cst_5 : f32 to vector<16x128xf32>
    %7 = arith.maximumf %5, %6 : vector<16x128xf32>
    %8 = arith.truncf %7 : vector<16x128xf32> to vector<16x128xbf16>
    %c0_6 = arith.constant 0 : index
    %c0_7 = arith.constant 0 : index
    %9 = vector.load %arg5[%c0_6, %c0_7] : memref<128x128xbf16, #tpu.memory_space<vmem>>, vector<128x128xbf16>
    %cst_8 = arith.constant dense<0.000000e+00> : vector<16x128xf32>
    %10 = tpu.matmul %8, %9, %cst_8 {dimension_numbers = #tpu.dot_dimension_numbers<[1], [0], [0], [1], [0, 0, 1, 1], [], []>} : vector<16x128xbf16>, vector<128x128xbf16>, vector<16x128xf32> -> vector<16x128xf32>
    %c0_9 = arith.constant 0 : index
    %c0_10 = arith.constant 0 : index
    %11 = vector.load %arg6[%c0_9, %c0_10] : memref<1x128xf32, #tpu.memory_space<vmem>>, vector<1x128xf32>
    %12 = vector.broadcast %11 : vector<1x128xf32> to vector<16x128xf32>
    %13 = arith.addf %10, %12 : vector<16x128xf32>
    %c0_11 = arith.constant 0 : index
    %c0_12 = arith.constant 0 : index
    %14 = vector.load %arg2[%c0_11, %c0_12] : memref<16x1xi32, #tpu.memory_space<vmem>>, vector<16x1xi32>
    %15 = tpu.iota {dimensions = array<i32: 1>} : vector<16x128xi32>
    %c8_i32 = arith.constant 8 : i32
    %16 = vector.broadcast %c8_i32 : i32 to vector<16x128xi32>
    %17 = arith.cmpi slt, %15, %16 : vector<16x128xi32>
    %cst_13 = arith.constant -1.000000e+30 : f32
    %18 = vector.broadcast %cst_13 : f32 to vector<16x128xf32>
    %19 = arith.select %17, %13, %18 : vector<16x128xi1>, vector<16x128xf32>
    %cst_14 = arith.constant dense<0xFF800000> : vector<16xf32>
    %20 = vector.multi_reduction <maximumf>, %19, %cst_14 [1] : vector<16x128xf32> to vector<16xf32>
    %21 = vector.shape_cast %20 : vector<16xf32> to vector<16x1xf32>
    %22 = vector.broadcast %21 : vector<16x1xf32> to vector<16x128xf32>
    %23 = arith.subf %19, %22 : vector<16x128xf32>
    %24 = math.exp %23 : vector<16x128xf32>
    %cst_15 = arith.constant dense<0.000000e+00> : vector<16xf32>
    %25 = vector.multi_reduction <add>, %24, %cst_15 [1] : vector<16x128xf32> to vector<16xf32>
    %26 = vector.shape_cast %25 : vector<16xf32> to vector<16x1xf32>
    %27 = math.log %26 : vector<16x1xf32>
    %28 = arith.addf %21, %27 : vector<16x1xf32>
    %29 = vector.broadcast %14 : vector<16x1xi32> to vector<16x128xi32>
    %30 = arith.cmpi eq, %15, %29 : vector<16x128xi32>
    %cst_16 = arith.constant 0.000000e+00 : f32
    %31 = vector.broadcast %cst_16 : f32 to vector<16x128xf32>
    %32 = arith.select %30, %19, %31 : vector<16x128xi1>, vector<16x128xf32>
    %cst_17 = arith.constant dense<0.000000e+00> : vector<16xf32>
    %33 = vector.multi_reduction <add>, %32, %cst_17 [1] : vector<16x128xf32> to vector<16xf32>
    %34 = vector.shape_cast %33 : vector<16xf32> to vector<16x1xf32>
    %c0_i32 = arith.constant 0 : i32
    %35 = vector.broadcast %c0_i32 : i32 to vector<16x1xi32>
    %36 = arith.cmpi ne, %14, %35 : vector<16x1xi32>
    %37 = arith.extui %36 : vector<16x1xi1> to vector<16x1xi32>
    %38 = arith.sitofp %37 : vector<16x1xi32> to vector<16x1xf32>
    %39 = arith.subf %28, %34 : vector<16x1xf32>
    %40 = arith.mulf %38, %39 : vector<16x1xf32>
    %41 = vector.shape_cast %40 : vector<16x1xf32> to vector<1x16x1xf32>
    %cst_18 = arith.constant dense<0.000000e+00> : vector<1xf32>
    %42 = vector.multi_reduction <add>, %41, %cst_18 [1, 2] : vector<1x16x1xf32> to vector<1xf32>
    %43 = vector.shape_cast %42 : vector<1xf32> to vector<1x1x1xf32>
    %44 = vector.extract %43[0, 0, 0] : f32 from vector<1x1x1xf32>
    %45 = vector.shape_cast %38 : vector<16x1xf32> to vector<1x16x1xf32>
    %cst_19 = arith.constant dense<0.000000e+00> : vector<1xf32>
    %46 = vector.multi_reduction <add>, %45, %cst_19 [1, 2] : vector<1x16x1xf32> to vector<1xf32>
    %47 = vector.shape_cast %46 : vector<1xf32> to vector<1x1x1xf32>
    %48 = vector.extract %47[0, 0, 0] : f32 from vector<1x1x1xf32>
    %49 = tpu.iota {dimensions = array<i32: 0>} : vector<8x128xi32>
    %50 = tpu.iota {dimensions = array<i32: 1>} : vector<8x128xi32>
    %c128_i32 = arith.constant 128 : i32
    %51 = vector.broadcast %c128_i32 : i32 to vector<8x128xi32>
    %52 = arith.muli %49, %51 : vector<8x128xi32>
    %53 = arith.addi %52, %50 : vector<8x128xi32>
    %cst_20 = arith.constant 0.000000e+00 : f32
    %54 = vector.broadcast %cst_20 : f32 to vector<8x128xf32>
    %c0_i32_21 = arith.constant 0 : i32
    %55 = vector.broadcast %c0_i32_21 : i32 to vector<8x128xi32>
    %56 = arith.cmpi eq, %53, %55 : vector<8x128xi32>
    %cst_22 = arith.constant 0.000000e+00 : f32
    %57 = vector.broadcast %44 : f32 to vector<8x128xf32>
    %58 = vector.broadcast %cst_22 : f32 to vector<8x128xf32>
    %59 = arith.select %56, %57, %58 : vector<8x128xi1>, vector<8x128xf32>
    %60 = arith.addf %54, %59 : vector<8x128xf32>
    %c1_i32 = arith.constant 1 : i32
    %61 = vector.broadcast %c1_i32 : i32 to vector<8x128xi32>
    %62 = arith.cmpi eq, %53, %61 : vector<8x128xi32>
    %cst_23 = arith.constant 0.000000e+00 : f32
    %63 = vector.broadcast %48 : f32 to vector<8x128xf32>
    %64 = vector.broadcast %cst_23 : f32 to vector<8x128xf32>
    %65 = arith.select %62, %63, %64 : vector<8x128xi1>, vector<8x128xf32>
    %66 = arith.addf %60, %65 : vector<8x128xf32>
    %c0_24 = arith.constant 0 : index
    %c0_25 = arith.constant 0 : index
    %67 = vector.load %arg7[%c0_24, %c0_25] : memref<8x128xf32, #tpu.memory_space<vmem>>, vector<8x128xf32>
    tpu.vector_store %arg7[%c0_24, %c0_25], %66 {strides = array<i32>} : memref<8x128xf32, #tpu.memory_space<vmem>>, vector<8x128xf32>,
    return
  }
  func.func @transform_0(%arg0: i32) -> (i32, i32) {
    %c0_i32 = arith.constant 0 : i32
    %c0_i32_0 = arith.constant 0 : i32
    return %arg0, %c0_i32 : i32, i32
  }
  func.func @transform_1(%arg0: i32) -> (i32, i32) {
    %c0_i32 = arith.constant 0 : i32
    %c0_i32_0 = arith.constant 0 : i32
    return %arg0, %c0_i32 : i32, i32
  }
  func.func @transform_2(%arg0: i32) -> (i32, i32) {
    %c0_i32 = arith.constant 0 : i32
    %c0_i32_0 = arith.constant 0 : i32
    %c0_i32_1 = arith.constant 0 : i32
    return %c0_i32, %c0_i32_0 : i32, i32
  }
  func.func @transform_3(%arg0: i32) -> (i32, i32) {
    %c0_i32 = arith.constant 0 : i32
    %c0_i32_0 = arith.constant 0 : i32
    %c0_i32_1 = arith.constant 0 : i32
    return %c0_i32, %c0_i32_0 : i32, i32
  }
  func.func @transform_4(%arg0: i32) -> (i32, i32) {
    %c0_i32 = arith.constant 0 : i32
    %c0_i32_0 = arith.constant 0 : i32
    %c0_i32_1 = arith.constant 0 : i32
    return %c0_i32, %c0_i32_0 : i32, i32
  }
  func.func @transform_5(%arg0: i32) -> (i32, i32) {
    %c0_i32 = arith.constant 0 : i32
    %c0_i32_0 = arith.constant 0 : i32
    %c0_i32_1 = arith.constant 0 : i32
    return %c0_i32, %c0_i32_0 : i32, i32
  }
  func.func @transform_6(%arg0: i32) -> (i32, i32) {
    %c0_i32 = arith.constant 0 : i32
    %c0_i32_0 = arith.constant 0 : i32
    return %arg0, %c0_i32 : i32, i32
  }
}

</mosaic_0001>

<bundles_post_ra>
// kernel: tpu_custom_call.1
= control target key start
LH: loop header
LB: loop body
LE: loop exit
PB: predicated region body
PF: predicated region fallthrough
CT: control target
= control target key end

     0   :  { %11 = vsyncpa [#allocation3], 0  ;;  %s534_s0 = inlined_call_operand.hbm [shape: bf16[16,32], index: 0, kind: input, shape index: {}]   ;;  %s535_s1 = inlined_call_operand.vmem [shape: s32[16,1], index: 1, kind: input, shape index: {}]   ;;  %s536_s2 = inlined_call_operand.vmem [shape: bf16[32,128], index: 2, kind: input, shape index: {}]   ;;  %s537_s3 = inlined_call_operand.vmem [shape: f32[1,128], index: 3, kind: input, shape index: {}]   ;;  %s538_s4 = inlined_call_operand.hbm [shape: bf16[128,128], index: 4, kind: input, shape index: {}]   ;;  %s539_s5 = inlined_call_operand.vmem [shape: f32[1,128], index: 5, kind: input, shape index: {}]   ;;  %s540_s6 = inlined_call_operand.hbm [shape: f32[8,128], index: 6, kind: output, shape index: {}]  }
   0x1   :  { %12 = vsyncpa [#allocation6], 0 }
   0x2   :  { %13 = vsyncpa [#allocation4], 0  ;;  %s18_s23 = sshll.u32 %s534_s0, 4  ;;  %s453_s24 = smov [#allocation2]   ;;  %s19_s23 = int_to_ptr.hbm [resolvable:$true] %s18_s23 }
   0x3   :  { %s20_s25 = sshll.u32 %s453_s24, 4  ;;  %s37_s28 = sshll.u32 %s538_s4, 4  ;;  %s21_s25 = int_to_ptr.vmem [resolvable:$true] %s20_s25  ;;  %s38_s28 = int_to_ptr.hbm [resolvable:$true] %s37_s28 }
   0x4   :  { %s454_s29 = smov 64   ;;  %s455_s30 = smov 4  }
   0x5   :  { %26 = dma.hbm_to_vmem [thread:$0]  %s19_s23, 128, %s21_s25, [#allocation3], %s454_s29, %s454_s29, %s455_s30  }
   0x6   :  { %s456_s7 = smov [#allocation5]  }
   0x7   :  { %s39_s8 = sshll.u32 %s456_s7, 4  ;;  %s40_s8 = int_to_ptr.vmem [resolvable:$true] %s39_s8 }
   0x8   :  { %45 = dma.hbm_to_vmem [thread:$0]  %s38_s28, 1024, %s40_s8, [#allocation6], %s454_s29, %s454_s29, %s455_s30  }
   0x9   :  { %447 = dma.done.wait [#allocation3], 128  }
   0xa   :  { %448 = vsyncadd [#allocation3], 4294967168 }
   0xb   :  { %449 = dma.done.wait [#allocation6], 1024  }
   0xc   :  { %450 = vsyncadd [#allocation6], 4294966272  ;;  %v343_v0 = vld [vmem:[%s536_s2 + $0x8] sm:$0xff]  ;;  %v351_v1 = vld [vmem:[#allocation5 + $0x38] sm:$0xff]  ;;  %vm84_vm0 = vcmask 261120   ;;  %v457_v12 = vmov 0   ;;  %v189_v22 = vlaneseq }
   0xd   :  { %94 = vmatpush.bf16.msra.mxu0 %v343_v0  ;;  %v342_v2 = vld [vmem:[%s536_s2] sm:$0xff]  ;;  %173 = vmatpush.bf16.msra.mxu1 %v351_v1  ;;  %v350_v3 = vld [vmem:[#allocation5 + $0x30] sm:$0xff]  ;;  %v349_v5 = vld [vmem:[#allocation5 + $0x28] sm:$0xff]  ;;  %v458_v43 = vmov 0.0   ;;  %vm238_vm6 = vcmask 7168   ;;  %s283_s21 = sshll.u32 %s540_s6, 4  ;;  %s284_s21 = int_to_ptr.hbm [resolvable:$true] %s283_s21 }
   0xe   :  { %v341_v4 = vld [vmem:[#allocation2] sm:$0xff]  ;;  %v348_v6 = vld [vmem:[#allocation5 + $0x20] sm:$0xff]  ;;  %v346_v8 = vld [vmem:[#allocation5 + $0x10] sm:$0xff]  ;;  %363 = vset.pattern.permute.xlu1 %v457_v12  ;;  %364 = vset.pattern.permute.xlu0 %v457_v12  ;;  %v517_v23 = vand.u32 127, %v189_v22 }
   0xf   :  { %v347_v7 = vld [vmem:[#allocation5 + $0x18] sm:$0xff]  ;;  %v345_v9 = vld [vmem:[#allocation5 + $0x8] sm:$0xff]  ;;  %v344_v10 = vld [vmem:[#allocation5] sm:$0xff] }
  0x10   :  { %v187_v11 = vld [vmem:[%s535_s1] sm:$0xff]  ;;  %v188_v13 = vld [vmem:[%s535_s1 + $0x8] sm:$0xff]  ;;  %vm191_vm1 = vcmp.lt.s32.totalorder %v517_v23, 8 }
  0x11   :  { %95 = vmatpush.bf16.msra.mxu0 %v342_v2  ;;  %174 = vmatpush.bf16.msra.mxu1 %v350_v3  ;;  %v365_v15 = vld [vmem:[%s537_s3] ss:$0 sm:$0xff]  ;;  %vm228_vm4 = vcmp.ne.s32.totalorder %v187_v11, 0  ;;  %vm229_vm5 = vcmp.ne.s32.totalorder %v188_v13, 0 }
  0x12   :  { %215 = vperm.xlu1 %363, %v187_v11   ;;  %v366_v25 = vld [vmem:[%s539_s5] ss:$0 sm:$0xff]  ;;  %v339_v44 = vsel %vm228_vm4, 1.0, %v458_v43  ;;  %v340_v45 = vsel %vm229_vm5, 1.0, %v458_v43  ;;  %s459_s5 = smov [#allocation7]  }
  0x13   :  { %v251_v46 = vsel %vm238_vm6, %v339_v44, 0.0  ;;  %v252_v47 = vsel %vm238_vm6, %v340_v45, 0.0  ;;  %s281_s17 = sshll.u32 %s459_s5, 4  ;;  %s282_s17 = int_to_ptr.vmem [resolvable:$true] %s281_s17 }
  0x14   :  { %306 = vmatmul.msk.bf16.vlgmr.msra.gmra.mxu0 %vm84_vm0, %v341_v4  ;;  %v253_v48 = vadd.f32 %v252_v47, %v251_v46 }
  0x15   :  { %175 = vmatpush.bf16.msra.mxu1 %v349_v5 }
  0x19   :  { %176 = vmatpush.bf16.msra.mxu1 %v348_v6 }
  0x1a   :  { %218 = vperm.xlu1 %363, %v188_v13  }
  0x1d   :  { %177 = vmatpush.bf16.msra.mxu1 %v347_v7 }
  0x21   :  { %178 = vmatpush.bf16.msra.mxu1 %v346_v8 }
  0x25   :  { %179 = vmatpush.bf16.msra.mxu1 %v345_v9 }
  0x29   :  { %180 = vmatpush.bf16.msra.mxu1 %v344_v10 }
  0x84   :  { %v216_v24 = vpop.permute.xlu1 %215 }
  0x85   :  { %vm220_vm3 = vcmp.eq.s32.totalorder %v517_v23, %v216_v24 }
  0x8c   :  { %v219_v29 = vpop.permute.xlu1 %218 }
  0x8d   :  { %vm221_vm2 = vcmp.eq.s32.totalorder %v517_v23, %v219_v29 }
  0x91   :  { %v97_v14 = vpop.f32.mrf.mxu0 }
  0x92   :  { %v98_v16 = vadd.f32 %v365_v15, %v97_v14 }
  0x94   :  { %v102_v19 = vmax.f32 %v98_v16, 0.0  ;;  %v264_v16 = vshrl.u32 %v189_v22, 7 }
  0x99   :  { %v99_v17 = vpop.f32.mrf.mxu0 }
  0x9a   :  { %v100_v18 = vadd.f32 %v365_v15, %v99_v17  ;;  %v265_v17 = vmul.u32 128, %v264_v16 }
  0x9c   :  { %v103_v20 = vmax.f32 %v100_v18, 0.0  ;;  %v266_v18 = vadd.s32 %v265_v17, %v517_v23 }
  0x9e   :  { %v104_v21 = vpack.c.bf16 %v103_v20, %v102_v19  ;;  %vm267_vm7 = vcmp.eq.s32.totalorder %v266_v18, 0  ;;  %vm271_vm8 = vcmp.eq.s32.totalorder %v266_v18, 1 }
  0xa0   :  { %181 = vmatmul.bf16.vlgmr.msra.gmra.mxu1 %v104_v21 }
 0x11d   :  { %v182_v26 = vpop.f32.mrf.mxu1 }
 0x11e   :  { %v183_v27 = vadd.f32 %v366_v25, %v182_v26 }
 0x120   :  { %v192_v28 = vsel %vm191_vm1, %v183_v27, -1e+30 }
 0x121   :  { %194 = vmax.xlane.f32.xlu0 %v192_v28  ;;  %v222_v34 = vsel %vm220_vm3, %v192_v28, 0.0 }
 0x125   :  { %v184_v30 = vpop.f32.mrf.mxu1 }
 0x126   :  { %v185_v31 = vadd.f32 %v366_v25, %v184_v30 }
 0x128   :  { %v193_v32 = vsel %vm191_vm1, %v185_v31, -1e+30 }
 0x129   :  { %196 = vmax.xlane.f32.xlu0 %v193_v32  ;;  %v223_v33 = vsel %vm221_vm2, %v193_v32, 0.0 }
 0x12a   :  { %226 = vadd.xlane.f32.xlu1 %v223_v33 }
 0x131   :  { %224 = vadd.xlane.f32.xlu0 %v222_v34 }
 0x139   :  { %254 = vadd.xlane.f32.xlu0 %v253_v48 }
 0x194   :  { %v195_v35 = vpop.xlane.xlu0 %194 }
 0x195   :  { %v198_v36 = vsub.f32 %v192_v28, %v195_v35 }
 0x197   :  { %v200_v37 = vmul.f32 1.442695, %v198_v36 }
 0x199   :  { %367 = vpow2.f32 %v200_v37 }
 0x19c   :  { %v197_v38 = vpop.xlane.xlu0 %196 }
 0x19d   :  { %v199_v39 = vsub.f32 %v193_v32, %v197_v38  ;;  %v227_v59 = vpop.xlane.xlu1 %226 }
 0x19f   :  { %v368_v40 = vpop.eup %367  ;;  %v202_v41 = vmul.f32 1.442695, %v199_v39 }
 0x1a0   :  { %204 = vadd.xlane.f32.xlu2 %v368_v40 }
 0x1a1   :  { %369 = vpow2.f32 %v202_v41 }
 0x1a4   :  { %v225_v55 = vpop.xlane.xlu0 %224 }
 0x1a7   :  { %v370_v42 = vpop.eup %369 }
 0x1a8   :  { %206 = vadd.xlane.f32.xlu2 %v370_v42 }
 0x1ac   :  { %v255_v2 = vpop.xlane.xlu0 %254 }
 0x1ad   :  { %v256_v3 = vrot.slane %v255_v2, 4 }
 0x1af   :  { %v257_v4 = vadd.f32 %v256_v3, %v255_v2 }
 0x1b1   :  { %v258_v5 = vrot.slane %v257_v4, 2 }
 0x1b3   :  { %v259_v9 = vadd.f32 %v258_v5, %v257_v4 }
 0x1b5   :  { %v260_v12 = vrot.slane %v259_v9, 1 }
 0x1b7   :  { %v261_v15 = vadd.f32 %v260_v12, %v259_v9 }
 0x213   :  { %v205_v49 = vpop.xlane.xlu2 %204 }
 0x214   :  { %371 = vlog2.f32 %v205_v49 }
 0x21a   :  { %v372_v50 = vpop.eup %371 }
 0x21b   :  { %v209_v51 = vmul.f32 0.6931472, %v372_v50  ;;  %v207_v52 = vpop.xlane.xlu2 %206 }
 0x21c   :  { %373 = vlog2.f32 %v207_v52 }
 0x21d   :  { %v212_v53 = vadd.f32 %v209_v51, %v195_v35 }
 0x21f   :  { %v234_v56 = vsub.f32 %v212_v53, %v225_v55 }
 0x221   :  { %v236_v61 = vmul.f32 %v339_v44, %v234_v56 }
 0x222   :  { %v374_v54 = vpop.eup %373 }
 0x223   :  { %v211_v57 = vmul.f32 0.6931472, %v374_v54  ;;  %v239_v63 = vsel %vm238_vm6, %v236_v61, 0.0 }
 0x225   :  { %v213_v58 = vadd.f32 %v211_v57, %v197_v38 }
 0x227   :  { %v235_v60 = vsub.f32 %v213_v58, %v227_v59 }
 0x229   :  { %v237_v62 = vmul.f32 %v340_v45, %v235_v60 }
 0x22b   :  { %v240_v0 = vsel %vm238_vm6, %v237_v62, 0.0 }
 0x22c   :  { %v241_v1 = vadd.f32 %v240_v0, %v239_v63 }
 0x22e   :  { %242 = vadd.xlane.f32.xlu2 %v241_v1 }
 0x2a1   :  { %v243_v6 = vpop.xlane.xlu2 %242 }
 0x2a2   :  { %v244_v7 = vrot.slane %v243_v6, 4 }
 0x2a4   :  { %v245_v8 = vadd.f32 %v244_v7, %v243_v6 }
 0x2a6   :  { %v246_v10 = vrot.slane %v245_v8, 2 }
 0x2a8   :  { %v247_v11 = vadd.f32 %v246_v10, %v245_v8 }
 0x2aa   :  { %v248_v13 = vrot.slane %v247_v11, 1 }
 0x2ac   :  { %v249_v14 = vadd.f32 %v248_v13, %v247_v11 }
 0x2ae   :  { %352 = vpush %v249_v14 }
 0x2af   :  { %354 = vpush %v261_v15 }
 0x2df   :  { %s353_s3 = spop %352 }
 0x2e0   :  { %v268_v19 = vstv %s353_s3  ;;  %s355_s18 = spop %354 }
 0x2e1   :  { %v269_v20 = vsel %vm267_vm7, %v268_v19, 0.0  ;;  %v272_v21 = vstv %s355_s18 }
 0x2e2   :  { %v273_v24 = vsel %vm271_vm8, %v272_v21, 0.0 }
 0x2e3   :  { %v274_v25 = vadd.f32 %v273_v24, %v269_v20 }
 0x2e5   :  { %275 = vst [vmem:[#allocation7] sm:$0xff] %v274_v25 }
 0x2e6   :  { %286 = dma.vmem_to_hbm [thread:$0]  %s282_s17, 128, %s284_s21, [#allocation4]  }
 0x2e7   :  { %451 = dma.done.wait [#allocation4], 128  }
 0x2e8   :  { %452 = vsyncadd [#allocation4], 4294967168 }
 0x2e9   :  { %291 = vsyncpa [#allocation3], 1 }
 0x2ea   :  { %292 = vsyncpa [#allocation6], 1 }
 0x2eb   :  { %293 = vsyncpa [#allocation4], 1 }

</bundles_post_ra>
